<compile_context>
chip_gen: v5e
topology: v5e:2x2
jax: 0.10.0
libtpu: 0.0.40
codegen_flags: <defaults>
</compile_context>

<pallas_src>
import math
import functools

import jax
import jax.numpy as jnp
from jax.experimental import pallas as pl
from jax.experimental.pallas import tpu as pltpu


def _layernorm(v, gamma, beta, eps=1e-6):
    v = v.astype(jnp.float32)
    mu = jnp.mean(v, axis=-1, keepdims=True)
    var = jnp.mean((v - mu) ** 2, axis=-1, keepdims=True)
    return (v - mu) * jax.lax.rsqrt(var + eps) * gamma + beta


def _gelu_exact(v):
    # PyTorch nn.GELU default (erf-based).
    return 0.5 * v * (1.0 + jax.lax.erf(v * (1.0 / math.sqrt(2.0))))


def encoder_block_kernel(
    x_tile_ref,                # (TQ, D) f32 — query tile of the input
    x_full_ref,                # (S,  D) f32 — full sequence (for K/V projections)
    ln1_g_ref, ln1_b_ref,      # (1, D) f32
    wqkv_ref, bqkv_ref,        # (D, 3D) bf16, (1, 3D) f32   (fused QKV)
    wo_ref, bo_ref,            # (D, D) bf16, (1, D) f32
    ln2_g_ref, ln2_b_ref,      # (1, D) f32
    w1_ref, b1_ref,            # (D, M) bf16, (1, M) f32
    w2_ref, b2_ref,            # (M, D) bf16, (1, D) f32
    out_ref,                   # (TQ, D)
    q_scr, k_scr, v_scr,       # VMEM (H, S, dh) bf16 — cached projections
    attn_scr,                  # VMEM (TQ, D) bf16 — head-merged attention output
    *, num_heads: int, tq: int, mlp_chunk: int,
):
    S, D = x_full_ref.shape
    H = num_heads
    dh = D // H
    scale = 1.0 / math.sqrt(dh)
    qi = pl.program_id(1)

    # ---- Once per batch element: LN1 + fused QKV over the full sequence ----
    @pl.when(qi == 0)
    def _():
        h_full = _layernorm(x_full_ref[...], ln1_g_ref[0], ln1_b_ref[0])
        qkv = jnp.dot(h_full.astype(jnp.bfloat16), wqkv_ref[...],
                      preferred_element_type=jnp.float32) + bqkv_ref[0]
        # Cache head-major (H, S, dh); Q pre-scaled by 1/sqrt(dh).
        for hd in range(H):
            lo = hd * dh
            q_scr[hd] = (qkv[:, lo:lo + dh] * scale).astype(jnp.bfloat16)
            k_scr[hd] = qkv[:, D + lo:D + lo + dh].astype(jnp.bfloat16)
            v_scr[hd] = qkv[:, 2 * D + lo:2 * D + lo + dh].astype(jnp.bfloat16)

    # ---- Batched multi-head attention for this query tile ----
    if tq == S:
        q_b = q_scr[...]                                   # (H, TQ, dh)
    else:
        q_start = pl.multiple_of(qi * tq, tq)
        q_b = q_scr[:, pl.ds(q_start, tq), :]
    k_b = k_scr[...]                                       # (H, S, dh)
    v_b = v_scr[...]

    s = jnp.einsum('hqd,hkd->hqk', q_b, k_b,
                   preferred_element_type=jnp.float32)     # (H, TQ, S)
    s = s - jnp.max(s, axis=-1, keepdims=True)
    p = jnp.exp(s)
    p = p * pl.reciprocal(jnp.sum(p, axis=-1, keepdims=True), approx=True)
    o_b = jnp.einsum('hqk,hkd->hqd', p.astype(jnp.bfloat16), v_b,
                     preferred_element_type=jnp.float32)   # (H, TQ, dh)

    # Merge heads via dense slice stores into VMEM scratch (no concatenate).
    for hd in range(H):
        attn_scr[:, hd * dh:(hd + 1) * dh] = o_b[hd].astype(jnp.bfloat16)

    attn = jnp.dot(attn_scr[...], wo_ref[...],
                   preferred_element_type=jnp.float32) + bo_ref[0]

    # ---- Residual 1 (dropout is identity in eval) ----
    x1 = attn + x_tile_ref[...].astype(jnp.float32)

    # ---- LN2 + MLP (chunked over the hidden dim M) ----
    y_ln = _layernorm(x1, ln2_g_ref[0], ln2_b_ref[0]).astype(jnp.bfloat16)
    M = w1_ref.shape[1]
    b1_full = b1_ref[0]
    y2 = jnp.zeros_like(x1)
    for lo in range(0, M, mlp_chunk):
        hi = min(M, lo + mlp_chunk)
        h1 = jnp.dot(y_ln, w1_ref[:, lo:hi],
                     preferred_element_type=jnp.float32) + b1_full[lo:hi]
        h1 = _gelu_exact(h1).astype(jnp.bfloat16)
        y2 = y2 + jnp.dot(h1, w2_ref[lo:hi, :],
                          preferred_element_type=jnp.float32)
    y2 = y2 + b2_ref[0]

    # ---- Residual 2 ----
    out_ref[...] = (x1 + y2).astype(out_ref.dtype)


def _pick_tq(S):
    for cand in (256, 128):
        if S % cand == 0:
            return cand
    return S


def _pick_mlp_chunk(M):
    for cand in (1024, 512):
        if M > cand and M % cand == 0:
            return cand
    return M


def _vmem_limit_bytes(S, D, M, TQ, H):
    bf, f32 = 2, 4
    weights = bf * (3 * D * D + D * D + 2 * D * M)           # bf16 weight blocks
    biases = f32 * (3 * D + D + M + D + 4 * D)
    io_bufs = 2 * f32 * (TQ * D + S * D) + 2 * f32 * (TQ * D)  # pipelined in/out
    scratch = bf * (3 * S * D + TQ * D)
    work = f32 * (2 * H * TQ * S + TQ * _pick_mlp_chunk(M) + 6 * TQ * D)
    est = 2 * weights + biases + io_bufs + scratch + work     # x2: double-buffering
    return int(min(60 * 1024 * 1024, max(32 * 1024 * 1024, 2 * est)))


def encoder_block(x, params, *, num_heads: int):
    """x: (B, S, D) float32. params: dict of f32 weights (see init_params)."""
    B, S, D = x.shape
    M = params["w1"].shape[1]
    H = num_heads
    assert D % H == 0, "hidden_dim must be divisible by num_heads"
    dh = D // H
    TQ = _pick_tq(S)
    NQ = S // TQ
    mlp_chunk = _pick_mlp_chunk(M)

    # bf16 weights (MXU-native, half the DMA bytes); biases / LN params stay f32.
    wqkv = jnp.concatenate(
        [params["wq"], params["wk"], params["wv"]], axis=1).astype(jnp.bfloat16)
    bqkv = jnp.concatenate([params["bq"], params["bk"], params["bv"]], axis=1)
    wo = params["wo"].astype(jnp.bfloat16)
    w1 = params["w1"].astype(jnp.bfloat16)
    w2 = params["w2"].astype(jnp.bfloat16)

    tile_map = lambda b, qi: (b, qi, 0)
    full_map = lambda b, qi: (b, 0, 0)
    const_map = lambda b, qi: (0, 0)

    in_specs = [
        pl.BlockSpec((None, TQ, D), tile_map),   # x query-tile (leading dim squeezed)
        pl.BlockSpec((None, S, D), full_map),    # x full sequence (for K/V)
        pl.BlockSpec((1, D), const_map), pl.BlockSpec((1, D), const_map),     # ln1
        pl.BlockSpec((D, 3 * D), const_map), pl.BlockSpec((1, 3 * D), const_map),
        pl.BlockSpec((D, D), const_map), pl.BlockSpec((1, D), const_map),     # Wo bo
        pl.BlockSpec((1, D), const_map), pl.BlockSpec((1, D), const_map),     # ln2
        pl.BlockSpec((D, M), const_map), pl.BlockSpec((1, M), const_map),     # W1 b1
        pl.BlockSpec((M, D), const_map), pl.BlockSpec((1, D), const_map),     # W2 b2
    ]

    kernel = functools.partial(
        encoder_block_kernel, num_heads=H, tq=TQ, mlp_chunk=mlp_chunk)

    out = pl.pallas_call(
        kernel,
        out_shape=jax.ShapeDtypeStruct((B, S, D), x.dtype),
        grid_spec=pltpu.PrefetchScalarGridSpec(
            num_scalar_prefetch=0,
            grid=(B, NQ),
            in_specs=in_specs,
            out_specs=pl.BlockSpec((None, TQ, D), tile_map),
            scratch_shapes=[
                pltpu.VMEM((H, S, dh), jnp.bfloat16),   # Q (pre-scaled), head-major
                pltpu.VMEM((H, S, dh), jnp.bfloat16),   # K
                pltpu.VMEM((H, S, dh), jnp.bfloat16),   # V
                pltpu.VMEM((TQ, D), jnp.bfloat16),      # head-merged attn output
            ],
        ),
        compiler_params=pltpu.CompilerParams(
            dimension_semantics=("parallel", "arbitrary"),
            vmem_limit_bytes=_vmem_limit_bytes(S, D, M, TQ, H),
        ),
    )(
        x, x,
        params["ln1_g"], params["ln1_b"],
        wqkv, bqkv,
        wo, params["bo"],
        params["ln2_g"], params["ln2_b"],
        w1, params["b1"],
        w2, params["b2"],
    )
    return out


def init_params(key, hidden_dim, mlp_dim):
    """Deterministic synthetic parameter init (shapes from EncoderBlock.__init__)."""
    D, M = hidden_dim, mlp_dim
    keys = jax.random.split(key, 8)
    sd = 1.0 / math.sqrt(D)
    sm = 1.0 / math.sqrt(M)
    return {
        "ln1_g": jnp.ones((1, D), jnp.float32),
        "ln1_b": jnp.zeros((1, D), jnp.float32),
        "wq": jax.random.normal(keys[0], (D, D), jnp.float32) * sd,
        "wk": jax.random.normal(keys[1], (D, D), jnp.float32) * sd,
        "wv": jax.random.normal(keys[2], (D, D), jnp.float32) * sd,
        "bq": jnp.zeros((1, D), jnp.float32),
        "bk": jnp.zeros((1, D), jnp.float32),
        "bv": jnp.zeros((1, D), jnp.float32),
        "wo": jax.random.normal(keys[3], (D, D), jnp.float32) * sd,
        "bo": jnp.zeros((1, D), jnp.float32),
        "ln2_g": jnp.ones((1, D), jnp.float32),
        "ln2_b": jnp.zeros((1, D), jnp.float32),
        "w1": jax.random.normal(keys[4], (D, M), jnp.float32) * sd,
        "b1": jax.random.normal(keys[5], (1, M), jnp.float32) * 0.01,
        "w2": jax.random.normal(keys[6], (M, D), jnp.float32) * sm,
        "b2": jax.random.normal(keys[7], (1, D), jnp.float32) * 0.01,
    }


if __name__ == "__main__":
    # Small shapes consistent with (batch_size, seq_length, hidden_dim)
    B, S, D, H, M = 2, 8, 32, 4, 64

    key = jax.random.PRNGKey(0)
    kx, kp = jax.random.split(key)
    x = jax.random.normal(kx, (B, S, D), jnp.float32)
    params = init_params(kp, hidden_dim=D, mlp_dim=M)

    out = encoder_block(x, params, num_heads=H)
    jax.block_until_ready(out)
    assert out.shape == (B, S, D), out.shape
    assert jnp.all(jnp.isfinite(out))
    print("KERNEL_OK")
</pallas_src>

<mosaic_0001>
module attributes {stable_mosaic.version = 11 : i64} {
  func.func @encoder_block_kernel(%arg0: i32, %arg1: i32, %arg2: memref<1x8x32xf32, #tpu.memory_space<vmem>>, %arg3: memref<1x8x32xf32, #tpu.memory_space<vmem>>, %arg4: memref<1x32xf32, #tpu.memory_space<vmem>>, %arg5: memref<1x32xf32, #tpu.memory_space<vmem>>, %arg6: memref<32x96xbf16, #tpu.memory_space<vmem>>, %arg7: memref<1x96xf32, #tpu.memory_space<vmem>>, %arg8: memref<32x32xbf16, #tpu.memory_space<vmem>>, %arg9: memref<1x32xf32, #tpu.memory_space<vmem>>, %arg10: memref<1x32xf32, #tpu.memory_space<vmem>>, %arg11: memref<1x32xf32, #tpu.memory_space<vmem>>, %arg12: memref<32x64xbf16, #tpu.memory_space<vmem>>, %arg13: memref<1x64xf32, #tpu.memory_space<vmem>>, %arg14: memref<64x32xbf16, #tpu.memory_space<vmem>>, %arg15: memref<1x32xf32, #tpu.memory_space<vmem>>, %arg16: memref<1x8x32xf32, #tpu.memory_space<vmem>>, %arg17: memref<4x8x8xbf16, #tpu.memory_space<vmem>>, %arg18: memref<4x8x8xbf16, #tpu.memory_space<vmem>>, %arg19: memref<4x8x8xbf16, #tpu.memory_space<vmem>>, %arg20: memref<8x32xbf16, #tpu.memory_space<vmem>>) attributes {dimension_semantics = [#tpu.dimension_semantics<parallel>, #tpu.dimension_semantics<arbitrary>], iteration_bounds = array<i64: 2, 1>, scalar_prefetch = 0 : i64, scratch_operands = 4 : i64, tpu.core_type = #tpu.core_type<tc>, window_params = [{transform_indices = @transform_0, window_bounds = array<i64: 1, 8, 32>}, {transform_indices = @transform_1, window_bounds = array<i64: 1, 8, 32>}, {pipeline_mode = #tpu.pipeline_mode<synchronous>, transform_indices = @transform_2, window_bounds = array<i64: 1, 32>}, {pipeline_mode = #tpu.pipeline_mode<synchronous>, transform_indices = @transform_3, window_bounds = array<i64: 1, 32>}, {pipeline_mode = #tpu.pipeline_mode<synchronous>, transform_indices = @transform_4, window_bounds = array<i64: 32, 96>}, {pipeline_mode = #tpu.pipeline_mode<synchronous>, transform_indices = @transform_5, window_bounds = array<i64: 1, 96>}, {pipeline_mode = #tpu.pipeline_mode<synchronous>, transform_indices = @transform_6, window_bounds = array<i64: 32, 32>}, {pipeline_mode = #tpu.pipeline_mode<synchronous>, transform_indices = @transform_7, window_bounds = array<i64: 1, 32>}, {pipeline_mode = #tpu.pipeline_mode<synchronous>, transform_indices = @transform_8, window_bounds = array<i64: 1, 32>}, {pipeline_mode = #tpu.pipeline_mode<synchronous>, transform_indices = @transform_9, window_bounds = array<i64: 1, 32>}, {pipeline_mode = #tpu.pipeline_mode<synchronous>, transform_indices = @transform_10, window_bounds = array<i64: 32, 64>}, {pipeline_mode = #tpu.pipeline_mode<synchronous>, transform_indices = @transform_11, window_bounds = array<i64: 1, 64>}, {pipeline_mode = #tpu.pipeline_mode<synchronous>, transform_indices = @transform_12, window_bounds = array<i64: 64, 32>}, {pipeline_mode = #tpu.pipeline_mode<synchronous>, transform_indices = @transform_13, window_bounds = array<i64: 1, 32>}, {transform_indices = @transform_14, window_bounds = array<i64: 1, 8, 32>}]} {
    %c0_i32 = arith.constant 0 : i32
    %0 = arith.cmpi eq, %arg1, %c0_i32 : i32
    %1 = arith.extui %0 : i1 to i32
    %c0_i32_0 = arith.constant 0 : i32
    %2 = arith.cmpi ne, %1, %c0_i32_0 : i32
    scf.if %2 {
      %c0_53 = arith.constant 0 : index
      %c0_54 = arith.constant 0 : index
      %c0_55 = arith.constant 0 : index
      %104 = vector.load %arg3[%c0_53, %c0_54, %c0_55] : memref<1x8x32xf32, #tpu.memory_space<vmem>>, vector<1x8x32xf32>
      %105 = vector.shape_cast %104 : vector<1x8x32xf32> to vector<8x32xf32>
      %c0_56 = arith.constant 0 : index
      %c0_57 = arith.constant 0 : index
      %106 = vector.load %arg4[%c0_56, %c0_57] : memref<1x32xf32, #tpu.memory_space<vmem>>, vector<1x32xf32>
      %107 = vector.shape_cast %106 : vector<1x32xf32> to vector<32xf32>
      %c0_58 = arith.constant 0 : index
      %c0_59 = arith.constant 0 : index
      %108 = vector.load %arg5[%c0_58, %c0_59] : memref<1x32xf32, #tpu.memory_space<vmem>>, vector<1x32xf32>
      %109 = vector.shape_cast %108 : vector<1x32xf32> to vector<32xf32>
      %cst_60 = arith.constant dense<0.000000e+00> : vector<8xf32>
      %110 = vector.multi_reduction <add>, %105, %cst_60 [1] : vector<8x32xf32> to vector<8xf32>
      %111 = vector.shape_cast %110 : vector<8xf32> to vector<8x1xf32>
      %cst_61 = arith.constant 3.200000e+01 : f32
      %112 = vector.broadcast %cst_61 : f32 to vector<8x1xf32>
      %113 = arith.divf %111, %112 : vector<8x1xf32>
      %114 = vector.broadcast %113 : vector<8x1xf32> to vector<8x32xf32>
      %115 = arith.subf %105, %114 : vector<8x32xf32>
      %116 = arith.mulf %115, %115 : vector<8x32xf32>
      %cst_62 = arith.constant dense<0.000000e+00> : vector<8xf32>
      %117 = vector.multi_reduction <add>, %116, %cst_62 [1] : vector<8x32xf32> to vector<8xf32>
      %118 = vector.shape_cast %117 : vector<8xf32> to vector<8x1xf32>
      %cst_63 = arith.constant 3.200000e+01 : f32
      %119 = vector.broadcast %cst_63 : f32 to vector<8x1xf32>
      %120 = arith.divf %118, %119 : vector<8x1xf32>
      %121 = vector.broadcast %113 : vector<8x1xf32> to vector<8x32xf32>
      %122 = arith.subf %105, %121 : vector<8x32xf32>
      %cst_64 = arith.constant 9.99999997E-7 : f32
      %123 = vector.broadcast %cst_64 : f32 to vector<8x1xf32>
      %124 = arith.addf %120, %123 : vector<8x1xf32>
      %125 = math.rsqrt %124 : vector<8x1xf32>
      %126 = vector.broadcast %125 : vector<8x1xf32> to vector<8x32xf32>
      %127 = arith.mulf %122, %126 : vector<8x32xf32>
      %128 = vector.shape_cast %107 : vector<32xf32> to vector<1x32xf32>
      %129 = vector.broadcast %128 : vector<1x32xf32> to vector<8x32xf32>
      %130 = arith.mulf %127, %129 : vector<8x32xf32>
      %131 = vector.shape_cast %109 : vector<32xf32> to vector<1x32xf32>
      %132 = vector.broadcast %131 : vector<1x32xf32> to vector<8x32xf32>
      %133 = arith.addf %130, %132 : vector<8x32xf32>
      %134 = arith.truncf %133 : vector<8x32xf32> to vector<8x32xbf16>
      %c0_65 = arith.constant 0 : index
      %c0_66 = arith.constant 0 : index
      %135 = vector.load %arg6[%c0_65, %c0_66] : memref<32x96xbf16, #tpu.memory_space<vmem>>, vector<32x96xbf16>
      %cst_67 = arith.constant dense<0.000000e+00> : vector<8x96xf32>
      %136 = tpu.matmul %134, %135, %cst_67 {dimension_numbers = #tpu.dot_dimension_numbers<[1], [0], [0], [1], [0, 0, 1, 1], [], []>} : vector<8x32xbf16>, vector<32x96xbf16>, vector<8x96xf32> -> vector<8x96xf32>
      %c0_68 = arith.constant 0 : index
      %c0_69 = arith.constant 0 : index
      %137 = vector.load %arg7[%c0_68, %c0_69] : memref<1x96xf32, #tpu.memory_space<vmem>>, vector<1x96xf32>
      %138 = vector.shape_cast %137 : vector<1x96xf32> to vector<96xf32>
      %139 = vector.shape_cast %138 : vector<96xf32> to vector<1x96xf32>
      %140 = vector.broadcast %139 : vector<1x96xf32> to vector<8x96xf32>
      %141 = arith.addf %136, %140 : vector<8x96xf32>
      %142 = vector.extract_strided_slice %141 {offsets = [0, 0], sizes = [8, 8], strides = [1, 1]} : vector<8x96xf32> to vector<8x8xf32>
      %cst_70 = arith.constant 0.353553385 : f32
      %143 = vector.broadcast %cst_70 : f32 to vector<8x8xf32>
      %144 = arith.mulf %142, %143 : vector<8x8xf32>
      %145 = arith.truncf %144 : vector<8x8xf32> to vector<8x8xbf16>
      %c0_71 = arith.constant 0 : index
      %c0_72 = arith.constant 0 : index
      %c0_73 = arith.constant 0 : index
      %146 = vector.load %arg17[%c0_71, %c0_72, %c0_73] : memref<4x8x8xbf16, #tpu.memory_space<vmem>>, vector<1x8x8xbf16>
      %147 = vector.shape_cast %146 : vector<1x8x8xbf16> to vector<8x8xbf16>
      %148 = vector.shape_cast %145 : vector<8x8xbf16> to vector<1x8x8xbf16>
      tpu.vector_store %arg17[%c0_71, %c0_72, %c0_73], %148 {strides = array<i32>} : memref<4x8x8xbf16, #tpu.memory_space<vmem>>, vector<1x8x8xbf16>,
      %149 = vector.extract_strided_slice %141 {offsets = [0, 32], sizes = [8, 8], strides = [1, 1]} : vector<8x96xf32> to vector<8x8xf32>
      %150 = arith.truncf %149 : vector<8x8xf32> to vector<8x8xbf16>
      %c0_74 = arith.constant 0 : index
      %c0_75 = arith.constant 0 : index
      %c0_76 = arith.constant 0 : index
      %151 = vector.load %arg18[%c0_74, %c0_75, %c0_76] : memref<4x8x8xbf16, #tpu.memory_space<vmem>>, vector<1x8x8xbf16>
      %152 = vector.shape_cast %151 : vector<1x8x8xbf16> to vector<8x8xbf16>
      %153 = vector.shape_cast %150 : vector<8x8xbf16> to vector<1x8x8xbf16>
      tpu.vector_store %arg18[%c0_74, %c0_75, %c0_76], %153 {strides = array<i32>} : memref<4x8x8xbf16, #tpu.memory_space<vmem>>, vector<1x8x8xbf16>,
      %154 = vector.extract_strided_slice %141 {offsets = [0, 64], sizes = [8, 8], strides = [1, 1]} : vector<8x96xf32> to vector<8x8xf32>
      %155 = arith.truncf %154 : vector<8x8xf32> to vector<8x8xbf16>
      %c0_77 = arith.constant 0 : index
      %c0_78 = arith.constant 0 : index
      %c0_79 = arith.constant 0 : index
      %156 = vector.load %arg19[%c0_77, %c0_78, %c0_79] : memref<4x8x8xbf16, #tpu.memory_space<vmem>>, vector<1x8x8xbf16>
      %157 = vector.shape_cast %156 : vector<1x8x8xbf16> to vector<8x8xbf16>
      %158 = vector.shape_cast %155 : vector<8x8xbf16> to vector<1x8x8xbf16>
      tpu.vector_store %arg19[%c0_77, %c0_78, %c0_79], %158 {strides = array<i32>} : memref<4x8x8xbf16, #tpu.memory_space<vmem>>, vector<1x8x8xbf16>,
      %159 = vector.extract_strided_slice %141 {offsets = [0, 8], sizes = [8, 8], strides = [1, 1]} : vector<8x96xf32> to vector<8x8xf32>
      %cst_80 = arith.constant 0.353553385 : f32
      %160 = vector.broadcast %cst_80 : f32 to vector<8x8xf32>
      %161 = arith.mulf %159, %160 : vector<8x8xf32>
      %162 = arith.truncf %161 : vector<8x8xf32> to vector<8x8xbf16>
      %c1 = arith.constant 1 : index
      %c0_81 = arith.constant 0 : index
      %c0_82 = arith.constant 0 : index
      %163 = vector.load %arg17[%c1, %c0_81, %c0_82] : memref<4x8x8xbf16, #tpu.memory_space<vmem>>, vector<1x8x8xbf16>
      %164 = vector.shape_cast %163 : vector<1x8x8xbf16> to vector<8x8xbf16>
      %165 = vector.shape_cast %162 : vector<8x8xbf16> to vector<1x8x8xbf16>
      tpu.vector_store %arg17[%c1, %c0_81, %c0_82], %165 {strides = array<i32>} : memref<4x8x8xbf16, #tpu.memory_space<vmem>>, vector<1x8x8xbf16>,
      %166 = vector.extract_strided_slice %141 {offsets = [0, 40], sizes = [8, 8], strides = [1, 1]} : vector<8x96xf32> to vector<8x8xf32>
      %167 = arith.truncf %166 : vector<8x8xf32> to vector<8x8xbf16>
      %c1_83 = arith.constant 1 : index
      %c0_84 = arith.constant 0 : index
      %c0_85 = arith.constant 0 : index
      %168 = vector.load %arg18[%c1_83, %c0_84, %c0_85] : memref<4x8x8xbf16, #tpu.memory_space<vmem>>, vector<1x8x8xbf16>
      %169 = vector.shape_cast %168 : vector<1x8x8xbf16> to vector<8x8xbf16>
      %170 = vector.shape_cast %167 : vector<8x8xbf16> to vector<1x8x8xbf16>
      tpu.vector_store %arg18[%c1_83, %c0_84, %c0_85], %170 {strides = array<i32>} : memref<4x8x8xbf16, #tpu.memory_space<vmem>>, vector<1x8x8xbf16>,
      %171 = vector.extract_strided_slice %141 {offsets = [0, 72], sizes = [8, 8], strides = [1, 1]} : vector<8x96xf32> to vector<8x8xf32>
      %172 = arith.truncf %171 : vector<8x8xf32> to vector<8x8xbf16>
      %c1_86 = arith.constant 1 : index
      %c0_87 = arith.constant 0 : index
      %c0_88 = arith.constant 0 : index
      %173 = vector.load %arg19[%c1_86, %c0_87, %c0_88] : memref<4x8x8xbf16, #tpu.memory_space<vmem>>, vector<1x8x8xbf16>
      %174 = vector.shape_cast %173 : vector<1x8x8xbf16> to vector<8x8xbf16>
      %175 = vector.shape_cast %172 : vector<8x8xbf16> to vector<1x8x8xbf16>
      tpu.vector_store %arg19[%c1_86, %c0_87, %c0_88], %175 {strides = array<i32>} : memref<4x8x8xbf16, #tpu.memory_space<vmem>>, vector<1x8x8xbf16>,
      %176 = vector.extract_strided_slice %141 {offsets = [0, 16], sizes = [8, 8], strides = [1, 1]} : vector<8x96xf32> to vector<8x8xf32>
      %cst_89 = arith.constant 0.353553385 : f32
      %177 = vector.broadcast %cst_89 : f32 to vector<8x8xf32>
      %178 = arith.mulf %176, %177 : vector<8x8xf32>
      %179 = arith.truncf %178 : vector<8x8xf32> to vector<8x8xbf16>
      %c2 = arith.constant 2 : index
      %c0_90 = arith.constant 0 : index
      %c0_91 = arith.constant 0 : index
      %180 = vector.load %arg17[%c2, %c0_90, %c0_91] : memref<4x8x8xbf16, #tpu.memory_space<vmem>>, vector<1x8x8xbf16>
      %181 = vector.shape_cast %180 : vector<1x8x8xbf16> to vector<8x8xbf16>
      %182 = vector.shape_cast %179 : vector<8x8xbf16> to vector<1x8x8xbf16>
      tpu.vector_store %arg17[%c2, %c0_90, %c0_91], %182 {strides = array<i32>} : memref<4x8x8xbf16, #tpu.memory_space<vmem>>, vector<1x8x8xbf16>,
      %183 = vector.extract_strided_slice %141 {offsets = [0, 48], sizes = [8, 8], strides = [1, 1]} : vector<8x96xf32> to vector<8x8xf32>
      %184 = arith.truncf %183 : vector<8x8xf32> to vector<8x8xbf16>
      %c2_92 = arith.constant 2 : index
      %c0_93 = arith.constant 0 : index
      %c0_94 = arith.constant 0 : index
      %185 = vector.load %arg18[%c2_92, %c0_93, %c0_94] : memref<4x8x8xbf16, #tpu.memory_space<vmem>>, vector<1x8x8xbf16>
      %186 = vector.shape_cast %185 : vector<1x8x8xbf16> to vector<8x8xbf16>
      %187 = vector.shape_cast %184 : vector<8x8xbf16> to vector<1x8x8xbf16>
      tpu.vector_store %arg18[%c2_92, %c0_93, %c0_94], %187 {strides = array<i32>} : memref<4x8x8xbf16, #tpu.memory_space<vmem>>, vector<1x8x8xbf16>,
      %188 = vector.extract_strided_slice %141 {offsets = [0, 80], sizes = [8, 8], strides = [1, 1]} : vector<8x96xf32> to vector<8x8xf32>
      %189 = arith.truncf %188 : vector<8x8xf32> to vector<8x8xbf16>
      %c2_95 = arith.constant 2 : index
      %c0_96 = arith.constant 0 : index
      %c0_97 = arith.constant 0 : index
      %190 = vector.load %arg19[%c2_95, %c0_96, %c0_97] : memref<4x8x8xbf16, #tpu.memory_space<vmem>>, vector<1x8x8xbf16>
      %191 = vector.shape_cast %190 : vector<1x8x8xbf16> to vector<8x8xbf16>
      %192 = vector.shape_cast %189 : vector<8x8xbf16> to vector<1x8x8xbf16>
      tpu.vector_store %arg19[%c2_95, %c0_96, %c0_97], %192 {strides = array<i32>} : memref<4x8x8xbf16, #tpu.memory_space<vmem>>, vector<1x8x8xbf16>,
      %193 = vector.extract_strided_slice %141 {offsets = [0, 24], sizes = [8, 8], strides = [1, 1]} : vector<8x96xf32> to vector<8x8xf32>
      %cst_98 = arith.constant 0.353553385 : f32
      %194 = vector.broadcast %cst_98 : f32 to vector<8x8xf32>
      %195 = arith.mulf %193, %194 : vector<8x8xf32>
      %196 = arith.truncf %195 : vector<8x8xf32> to vector<8x8xbf16>
      %c3 = arith.constant 3 : index
      %c0_99 = arith.constant 0 : index
      %c0_100 = arith.constant 0 : index
      %197 = vector.load %arg17[%c3, %c0_99, %c0_100] : memref<4x8x8xbf16, #tpu.memory_space<vmem>>, vector<1x8x8xbf16>
      %198 = vector.shape_cast %197 : vector<1x8x8xbf16> to vector<8x8xbf16>
      %199 = vector.shape_cast %196 : vector<8x8xbf16> to vector<1x8x8xbf16>
      tpu.vector_store %arg17[%c3, %c0_99, %c0_100], %199 {strides = array<i32>} : memref<4x8x8xbf16, #tpu.memory_space<vmem>>, vector<1x8x8xbf16>,
      %200 = vector.extract_strided_slice %141 {offsets = [0, 56], sizes = [8, 8], strides = [1, 1]} : vector<8x96xf32> to vector<8x8xf32>
      %201 = arith.truncf %200 : vector<8x8xf32> to vector<8x8xbf16>
      %c3_101 = arith.constant 3 : index
      %c0_102 = arith.constant 0 : index
      %c0_103 = arith.constant 0 : index
      %202 = vector.load %arg18[%c3_101, %c0_102, %c0_103] : memref<4x8x8xbf16, #tpu.memory_space<vmem>>, vector<1x8x8xbf16>
      %203 = vector.shape_cast %202 : vector<1x8x8xbf16> to vector<8x8xbf16>
      %204 = vector.shape_cast %201 : vector<8x8xbf16> to vector<1x8x8xbf16>
      tpu.vector_store %arg18[%c3_101, %c0_102, %c0_103], %204 {strides = array<i32>} : memref<4x8x8xbf16, #tpu.memory_space<vmem>>, vector<1x8x8xbf16>,
      %205 = vector.extract_strided_slice %141 {offsets = [0, 88], sizes = [8, 8], strides = [1, 1]} : vector<8x96xf32> to vector<8x8xf32>
      %206 = arith.truncf %205 : vector<8x8xf32> to vector<8x8xbf16>
      %c3_104 = arith.constant 3 : index
      %c0_105 = arith.constant 0 : index
      %c0_106 = arith.constant 0 : index
      %207 = vector.load %arg19[%c3_104, %c0_105, %c0_106] : memref<4x8x8xbf16, #tpu.memory_space<vmem>>, vector<1x8x8xbf16>
      %208 = vector.shape_cast %207 : vector<1x8x8xbf16> to vector<8x8xbf16>
      %209 = vector.shape_cast %206 : vector<8x8xbf16> to vector<1x8x8xbf16>
      tpu.vector_store %arg19[%c3_104, %c0_105, %c0_106], %209 {strides = array<i32>} : memref<4x8x8xbf16, #tpu.memory_space<vmem>>, vector<1x8x8xbf16>,
    } else {
    }
    %c0 = arith.constant 0 : index
    %c0_1 = arith.constant 0 : index
    %c0_2 = arith.constant 0 : index
    %3 = vector.load %arg17[%c0, %c0_1, %c0_2] : memref<4x8x8xbf16, #tpu.memory_space<vmem>>, vector<4x8x8xbf16>
    %c0_3 = arith.constant 0 : index
    %c0_4 = arith.constant 0 : index
    %c0_5 = arith.constant 0 : index
    %4 = vector.load %arg18[%c0_3, %c0_4, %c0_5] : memref<4x8x8xbf16, #tpu.memory_space<vmem>>, vector<4x8x8xbf16>
    %c0_6 = arith.constant 0 : index
    %c0_7 = arith.constant 0 : index
    %c0_8 = arith.constant 0 : index
    %5 = vector.load %arg19[%c0_6, %c0_7, %c0_8] : memref<4x8x8xbf16, #tpu.memory_space<vmem>>, vector<4x8x8xbf16>
    "tpu.trace_start"() <{level = 10 : i32, message = "hqd,hkd->hqk"}> : () -> ()
    %cst = arith.constant dense<0.000000e+00> : vector<4x8x8xf32>
    %6 = tpu.matmul %3, %4, %cst {dimension_numbers = #tpu.dot_dimension_numbers<[2], [2], [1], [1], [0, 0, 0, 1, 1, 1], [0], [0]>} : vector<4x8x8xbf16>, vector<4x8x8xbf16>, vector<4x8x8xf32> -> vector<4x8x8xf32>
    "tpu.trace_stop"() : () -> ()
    %cst_9 = arith.constant dense<0xFF800000> : vector<4x8xf32>
    %7 = vector.multi_reduction <maximumf>, %6, %cst_9 [2] : vector<4x8x8xf32> to vector<4x8xf32>
    %8 = vector.shape_cast %7 : vector<4x8xf32> to vector<4x8x1xf32>
    %9 = vector.broadcast %8 : vector<4x8x1xf32> to vector<4x8x8xf32>
    %10 = arith.subf %6, %9 : vector<4x8x8xf32>
    %11 = math.exp %10 : vector<4x8x8xf32>
    %cst_10 = arith.constant dense<0.000000e+00> : vector<4x8xf32>
    %12 = vector.multi_reduction <add>, %11, %cst_10 [2] : vector<4x8x8xf32> to vector<4x8xf32>
    %13 = vector.shape_cast %12 : vector<4x8xf32> to vector<4x8x1xf32>
    %14 = tpu.reciprocal %13 {approx = true} : vector<4x8x1xf32> -> vector<4x8x1xf32>
    %15 = vector.broadcast %14 : vector<4x8x1xf32> to vector<4x8x8xf32>
    %16 = arith.mulf %11, %15 : vector<4x8x8xf32>
    %17 = arith.truncf %16 : vector<4x8x8xf32> to vector<4x8x8xbf16>
    "tpu.trace_start"() <{level = 10 : i32, message = "hqk,hkd->hqd"}> : () -> ()
    %cst_11 = arith.constant dense<0.000000e+00> : vector<4x8x8xf32>
    %18 = tpu.matmul %17, %5, %cst_11 {dimension_numbers = #tpu.dot_dimension_numbers<[2], [1], [1], [2], [0, 0, 0, 1, 1, 2], [0], [0]>} : vector<4x8x8xbf16>, vector<4x8x8xbf16>, vector<4x8x8xf32> -> vector<4x8x8xf32>
    "tpu.trace_stop"() : () -> ()
    %19 = vector.extract_strided_slice %18 {offsets = [0, 0, 0], sizes = [1, 8, 8], strides = [1, 1, 1]} : vector<4x8x8xf32> to vector<1x8x8xf32>
    %20 = vector.shape_cast %19 : vector<1x8x8xf32> to vector<8x8xf32>
    %21 = arith.truncf %20 : vector<8x8xf32> to vector<8x8xbf16>
    %c0_12 = arith.constant 0 : index
    %c0_13 = arith.constant 0 : index
    %22 = vector.load %arg20[%c0_12, %c0_13] : memref<8x32xbf16, #tpu.memory_space<vmem>>, vector<8x8xbf16>
    tpu.vector_store %arg20[%c0_12, %c0_13], %21 {strides = array<i32>} : memref<8x32xbf16, #tpu.memory_space<vmem>>, vector<8x8xbf16>,
    %23 = vector.extract_strided_slice %18 {offsets = [1, 0, 0], sizes = [1, 8, 8], strides = [1, 1, 1]} : vector<4x8x8xf32> to vector<1x8x8xf32>
    %24 = vector.shape_cast %23 : vector<1x8x8xf32> to vector<8x8xf32>
    %25 = arith.truncf %24 : vector<8x8xf32> to vector<8x8xbf16>
    %c0_14 = arith.constant 0 : index
    %c8 = arith.constant 8 : index
    %26 = vector.load %arg20[%c0_14, %c8] : memref<8x32xbf16, #tpu.memory_space<vmem>>, vector<8x8xbf16>
    tpu.vector_store %arg20[%c0_14, %c8], %25 {strides = array<i32>} : memref<8x32xbf16, #tpu.memory_space<vmem>>, vector<8x8xbf16>,
    %27 = vector.extract_strided_slice %18 {offsets = [2, 0, 0], sizes = [1, 8, 8], strides = [1, 1, 1]} : vector<4x8x8xf32> to vector<1x8x8xf32>
    %28 = vector.shape_cast %27 : vector<1x8x8xf32> to vector<8x8xf32>
    %29 = arith.truncf %28 : vector<8x8xf32> to vector<8x8xbf16>
    %c0_15 = arith.constant 0 : index
    %c16 = arith.constant 16 : index
    %30 = vector.load %arg20[%c0_15, %c16] : memref<8x32xbf16, #tpu.memory_space<vmem>>, vector<8x8xbf16>
    tpu.vector_store %arg20[%c0_15, %c16], %29 {strides = array<i32>} : memref<8x32xbf16, #tpu.memory_space<vmem>>, vector<8x8xbf16>,
    %31 = vector.extract_strided_slice %18 {offsets = [3, 0, 0], sizes = [1, 8, 8], strides = [1, 1, 1]} : vector<4x8x8xf32> to vector<1x8x8xf32>
    %32 = vector.shape_cast %31 : vector<1x8x8xf32> to vector<8x8xf32>
    %33 = arith.truncf %32 : vector<8x8xf32> to vector<8x8xbf16>
    %c0_16 = arith.constant 0 : index
    %c24 = arith.constant 24 : index
    %34 = vector.load %arg20[%c0_16, %c24] : memref<8x32xbf16, #tpu.memory_space<vmem>>, vector<8x8xbf16>
    tpu.vector_store %arg20[%c0_16, %c24], %33 {strides = array<i32>} : memref<8x32xbf16, #tpu.memory_space<vmem>>, vector<8x8xbf16>,
    %c0_17 = arith.constant 0 : index
    %c0_18 = arith.constant 0 : index
    %35 = vector.load %arg20[%c0_17, %c0_18] : memref<8x32xbf16, #tpu.memory_space<vmem>>, vector<8x32xbf16>
    %c0_19 = arith.constant 0 : index
    %c0_20 = arith.constant 0 : index
    %36 = vector.load %arg8[%c0_19, %c0_20] : memref<32x32xbf16, #tpu.memory_space<vmem>>, vector<32x32xbf16>
    %cst_21 = arith.constant dense<0.000000e+00> : vector<8x32xf32>
    %37 = tpu.matmul %35, %36, %cst_21 {dimension_numbers = #tpu.dot_dimension_numbers<[1], [0], [0], [1], [0, 0, 1, 1], [], []>} : vector<8x32xbf16>, vector<32x32xbf16>, vector<8x32xf32> -> vector<8x32xf32>
    %c0_22 = arith.constant 0 : index
    %c0_23 = arith.constant 0 : index
    %38 = vector.load %arg9[%c0_22, %c0_23] : memref<1x32xf32, #tpu.memory_space<vmem>>, vector<1x32xf32>
    %39 = vector.shape_cast %38 : vector<1x32xf32> to vector<32xf32>
    %40 = vector.shape_cast %39 : vector<32xf32> to vector<1x32xf32>
    %41 = vector.broadcast %40 : vector<1x32xf32> to vector<8x32xf32>
    %42 = arith.addf %37, %41 : vector<8x32xf32>
    %c0_24 = arith.constant 0 : index
    %c0_25 = arith.constant 0 : index
    %c0_26 = arith.constant 0 : index
    %43 = vector.load %arg2[%c0_24, %c0_25, %c0_26] : memref<1x8x32xf32, #tpu.memory_space<vmem>>, vector<1x8x32xf32>
    %44 = vector.shape_cast %43 : vector<1x8x32xf32> to vector<8x32xf32>
    %45 = arith.addf %42, %44 : vector<8x32xf32>
    %c0_27 = arith.constant 0 : index
    %c0_28 = arith.constant 0 : index
    %46 = vector.load %arg10[%c0_27, %c0_28] : memref<1x32xf32, #tpu.memory_space<vmem>>, vector<1x32xf32>
    %47 = vector.shape_cast %46 : vector<1x32xf32> to vector<32xf32>
    %c0_29 = arith.constant 0 : index
    %c0_30 = arith.constant 0 : index
    %48 = vector.load %arg11[%c0_29, %c0_30] : memref<1x32xf32, #tpu.memory_space<vmem>>, vector<1x32xf32>
    %49 = vector.shape_cast %48 : vector<1x32xf32> to vector<32xf32>
    %cst_31 = arith.constant dense<0.000000e+00> : vector<8xf32>
    %50 = vector.multi_reduction <add>, %45, %cst_31 [1] : vector<8x32xf32> to vector<8xf32>
    %51 = vector.shape_cast %50 : vector<8xf32> to vector<8x1xf32>
    %cst_32 = arith.constant 3.200000e+01 : f32
    %52 = vector.broadcast %cst_32 : f32 to vector<8x1xf32>
    %53 = arith.divf %51, %52 : vector<8x1xf32>
    %54 = vector.broadcast %53 : vector<8x1xf32> to vector<8x32xf32>
    %55 = arith.subf %45, %54 : vector<8x32xf32>
    %56 = arith.mulf %55, %55 : vector<8x32xf32>
    %cst_33 = arith.constant dense<0.000000e+00> : vector<8xf32>
    %57 = vector.multi_reduction <add>, %56, %cst_33 [1] : vector<8x32xf32> to vector<8xf32>
    %58 = vector.shape_cast %57 : vector<8xf32> to vector<8x1xf32>
    %cst_34 = arith.constant 3.200000e+01 : f32
    %59 = vector.broadcast %cst_34 : f32 to vector<8x1xf32>
    %60 = arith.divf %58, %59 : vector<8x1xf32>
    %61 = vector.broadcast %53 : vector<8x1xf32> to vector<8x32xf32>
    %62 = arith.subf %45, %61 : vector<8x32xf32>
    %cst_35 = arith.constant 9.99999997E-7 : f32
    %63 = vector.broadcast %cst_35 : f32 to vector<8x1xf32>
    %64 = arith.addf %60, %63 : vector<8x1xf32>
    %65 = math.rsqrt %64 : vector<8x1xf32>
    %66 = vector.broadcast %65 : vector<8x1xf32> to vector<8x32xf32>
    %67 = arith.mulf %62, %66 : vector<8x32xf32>
    %68 = vector.shape_cast %47 : vector<32xf32> to vector<1x32xf32>
    %69 = vector.broadcast %68 : vector<1x32xf32> to vector<8x32xf32>
    %70 = arith.mulf %67, %69 : vector<8x32xf32>
    %71 = vector.shape_cast %49 : vector<32xf32> to vector<1x32xf32>
    %72 = vector.broadcast %71 : vector<1x32xf32> to vector<8x32xf32>
    %73 = arith.addf %70, %72 : vector<8x32xf32>
    %74 = arith.truncf %73 : vector<8x32xf32> to vector<8x32xbf16>
    %c0_36 = arith.constant 0 : index
    %c0_37 = arith.constant 0 : index
    %75 = vector.load %arg13[%c0_36, %c0_37] : memref<1x64xf32, #tpu.memory_space<vmem>>, vector<1x64xf32>
    %76 = vector.shape_cast %75 : vector<1x64xf32> to vector<64xf32>
    %cst_38 = arith.constant 0.000000e+00 : f32
    %77 = vector.broadcast %cst_38 : f32 to vector<8x32xf32>
    %c0_39 = arith.constant 0 : index
    %c0_40 = arith.constant 0 : index
    %78 = vector.load %arg12[%c0_39, %c0_40] : memref<32x64xbf16, #tpu.memory_space<vmem>>, vector<32x64xbf16>
    %cst_41 = arith.constant dense<0.000000e+00> : vector<8x64xf32>
    %79 = tpu.matmul %74, %78, %cst_41 {dimension_numbers = #tpu.dot_dimension_numbers<[1], [0], [0], [1], [0, 0, 1, 1], [], []>} : vector<8x32xbf16>, vector<32x64xbf16>, vector<8x64xf32> -> vector<8x64xf32>
    %80 = vector.shape_cast %76 : vector<64xf32> to vector<1x64xf32>
    %81 = vector.broadcast %80 : vector<1x64xf32> to vector<8x64xf32>
    %82 = arith.addf %79, %81 : vector<8x64xf32>
    %cst_42 = arith.constant 5.000000e-01 : f32
    %83 = vector.broadcast %cst_42 : f32 to vector<8x64xf32>
    %84 = arith.mulf %83, %82 : vector<8x64xf32>
    %cst_43 = arith.constant 0.707106769 : f32
    %85 = vector.broadcast %cst_43 : f32 to vector<8x64xf32>
    %86 = arith.mulf %82, %85 : vector<8x64xf32>
    %87 = math.erf %86 : vector<8x64xf32>
    %cst_44 = arith.constant 1.000000e+00 : f32
    %88 = vector.broadcast %cst_44 : f32 to vector<8x64xf32>
    %89 = arith.addf %88, %87 : vector<8x64xf32>
    %90 = arith.mulf %84, %89 : vector<8x64xf32>
    %91 = arith.truncf %90 : vector<8x64xf32> to vector<8x64xbf16>
    %c0_45 = arith.constant 0 : index
    %c0_46 = arith.constant 0 : index
    %92 = vector.load %arg14[%c0_45, %c0_46] : memref<64x32xbf16, #tpu.memory_space<vmem>>, vector<64x32xbf16>
    %cst_47 = arith.constant dense<0.000000e+00> : vector<8x32xf32>
    %93 = tpu.matmul %91, %92, %cst_47 {dimension_numbers = #tpu.dot_dimension_numbers<[1], [0], [0], [1], [0, 0, 1, 1], [], []>} : vector<8x64xbf16>, vector<64x32xbf16>, vector<8x32xf32> -> vector<8x32xf32>
    %94 = arith.addf %77, %93 : vector<8x32xf32>
    %c0_48 = arith.constant 0 : index
    %c0_49 = arith.constant 0 : index
    %95 = vector.load %arg15[%c0_48, %c0_49] : memref<1x32xf32, #tpu.memory_space<vmem>>, vector<1x32xf32>
    %96 = vector.shape_cast %95 : vector<1x32xf32> to vector<32xf32>
    %97 = vector.shape_cast %96 : vector<32xf32> to vector<1x32xf32>
    %98 = vector.broadcast %97 : vector<1x32xf32> to vector<8x32xf32>
    %99 = arith.addf %94, %98 : vector<8x32xf32>
    %100 = arith.addf %45, %99 : vector<8x32xf32>
    %c0_50 = arith.constant 0 : index
    %c0_51 = arith.constant 0 : index
    %c0_52 = arith.constant 0 : index
    %101 = vector.load %arg16[%c0_50, %c0_51, %c0_52] : memref<1x8x32xf32, #tpu.memory_space<vmem>>, vector<1x8x32xf32>
    %102 = vector.shape_cast %101 : vector<1x8x32xf32> to vector<8x32xf32>
    %103 = vector.shape_cast %100 : vector<8x32xf32> to vector<1x8x32xf32>
    tpu.vector_store %arg16[%c0_50, %c0_51, %c0_52], %103 {strides = array<i32>} : memref<1x8x32xf32, #tpu.memory_space<vmem>>, vector<1x8x32xf32>,
    return
  }
  func.func @transform_0(%arg0: i32, %arg1: i32) -> (i32, i32, i32) {
    %c0_i32 = arith.constant 0 : i32
    %c0_i32_0 = arith.constant 0 : i32
    return %arg0, %arg1, %c0_i32 : i32, i32, i32
  }
  func.func @transform_1(%arg0: i32, %arg1: i32) -> (i32, i32, i32) {
    %c0_i32 = arith.constant 0 : i32
    %c0_i32_0 = arith.constant 0 : i32
    %c0_i32_1 = arith.constant 0 : i32
    return %arg0, %c0_i32, %c0_i32_0 : i32, i32, i32
  }
  func.func @transform_2(%arg0: i32, %arg1: i32) -> (i32, i32) {
    %c0_i32 = arith.constant 0 : i32
    %c0_i32_0 = arith.constant 0 : i32
    %c0_i32_1 = arith.constant 0 : i32
    return %c0_i32, %c0_i32_0 : i32, i32
  }
  func.func @transform_3(%arg0: i32, %arg1: i32) -> (i32, i32) {
    %c0_i32 = arith.constant 0 : i32
    %c0_i32_0 = arith.constant 0 : i32
    %c0_i32_1 = arith.constant 0 : i32
    return %c0_i32, %c0_i32_0 : i32, i32
  }
  func.func @transform_4(%arg0: i32, %arg1: i32) -> (i32, i32) {
    %c0_i32 = arith.constant 0 : i32
    %c0_i32_0 = arith.constant 0 : i32
    %c0_i32_1 = arith.constant 0 : i32
    return %c0_i32, %c0_i32_0 : i32, i32
  }
  func.func @transform_5(%arg0: i32, %arg1: i32) -> (i32, i32) {
    %c0_i32 = arith.constant 0 : i32
    %c0_i32_0 = arith.constant 0 : i32
    %c0_i32_1 = arith.constant 0 : i32
    return %c0_i32, %c0_i32_0 : i32, i32
  }
  func.func @transform_6(%arg0: i32, %arg1: i32) -> (i32, i32) {
    %c0_i32 = arith.constant 0 : i32
    %c0_i32_0 = arith.constant 0 : i32
    %c0_i32_1 = arith.constant 0 : i32
    return %c0_i32, %c0_i32_0 : i32, i32
  }
  func.func @transform_7(%arg0: i32, %arg1: i32) -> (i32, i32) {
    %c0_i32 = arith.constant 0 : i32
    %c0_i32_0 = arith.constant 0 : i32
    %c0_i32_1 = arith.constant 0 : i32
    return %c0_i32, %c0_i32_0 : i32, i32
  }
  func.func @transform_8(%arg0: i32, %arg1: i32) -> (i32, i32) {
    %c0_i32 = arith.constant 0 : i32
    %c0_i32_0 = arith.constant 0 : i32
    %c0_i32_1 = arith.constant 0 : i32
    return %c0_i32, %c0_i32_0 : i32, i32
  }
  func.func @transform_9(%arg0: i32, %arg1: i32) -> (i32, i32) {
    %c0_i32 = arith.constant 0 : i32
    %c0_i32_0 = arith.constant 0 : i32
    %c0_i32_1 = arith.constant 0 : i32
    return %c0_i32, %c0_i32_0 : i32, i32
  }
  func.func @transform_10(%arg0: i32, %arg1: i32) -> (i32, i32) {
    %c0_i32 = arith.constant 0 : i32
    %c0_i32_0 = arith.constant 0 : i32
    %c0_i32_1 = arith.constant 0 : i32
    return %c0_i32, %c0_i32_0 : i32, i32
  }
  func.func @transform_11(%arg0: i32, %arg1: i32) -> (i32, i32) {
    %c0_i32 = arith.constant 0 : i32
    %c0_i32_0 = arith.constant 0 : i32
    %c0_i32_1 = arith.constant 0 : i32
    return %c0_i32, %c0_i32_0 : i32, i32
  }
  func.func @transform_12(%arg0: i32, %arg1: i32) -> (i32, i32) {
    %c0_i32 = arith.constant 0 : i32
    %c0_i32_0 = arith.constant 0 : i32
    %c0_i32_1 = arith.constant 0 : i32
    return %c0_i32, %c0_i32_0 : i32, i32
  }
  func.func @transform_13(%arg0: i32, %arg1: i32) -> (i32, i32) {
    %c0_i32 = arith.constant 0 : i32
    %c0_i32_0 = arith.constant 0 : i32
    %c0_i32_1 = arith.constant 0 : i32
    return %c0_i32, %c0_i32_0 : i32, i32
  }
  func.func @transform_14(%arg0: i32, %arg1: i32) -> (i32, i32, i32) {
    %c0_i32 = arith.constant 0 : i32
    %c0_i32_0 = arith.constant 0 : i32
    return %arg0, %arg1, %c0_i32 : i32, i32, i32
  }
}

</mosaic_0001>

<bundles_post_ra>
// kernel: tpu_custom_call.1
= control target key start
LH: loop header
LB: loop body
LE: loop exit
PB: predicated region body
PF: predicated region fallthrough
CT: control target
= control target key end

     0   :  { %19 = vsyncpa [#allocation7], 0  ;;  %s1947_s0 = inlined_call_operand.vmem [shape: f32[2,8,32], index: 0, kind: input, shape index: {}]   ;;  %s1948_s1 = inlined_call_operand.vmem [shape: f32[2,8,32], index: 1, kind: input, shape index: {}]   ;;  %s1949_s2 = inlined_call_operand.vmem [shape: f32[1,32], index: 2, kind: input, shape index: {}]   ;;  %s1950_s3 = inlined_call_operand.vmem [shape: f32[1,32], index: 3, kind: input, shape index: {}]   ;;  %s1951_s4 = inlined_call_operand.vmem [shape: bf16[32,96], index: 4, kind: input, shape index: {}]   ;;  %s1952_s5 = inlined_call_operand.vmem [shape: f32[1,96], index: 5, kind: input, shape index: {}]   ;;  %s1953_s6 = inlined_call_operand.hbm [shape: bf16[32,32], index: 6, kind: input, shape index: {}]   ;;  %s1954_s7 = inlined_call_operand.vmem [shape: f32[1,32], index: 7, kind: input, shape index: {}]   ;;  %s1955_s8 = inlined_call_operand.vmem [shape: f32[1,32], index: 8, kind: input, shape index: {}]   ;;  %s1956_s9 = inlined_call_operand.vmem [shape: f32[1,32], index: 9, kind: input, shape index: {}]   ;;  %s1957_s10 = inlined_call_operand.hbm [shape: bf16[32,64], index: 10, kind: input, shape index: {}]   ;;  %s1958_s11 = inlined_call_operand.vmem [shape: f32[1,64], index: 11, kind: input, shape index: {}]   ;;  %s1959_s12 = inlined_call_operand.vmem [shape: bf16[64,32], index: 12, kind: input, shape index: {}]   ;;  %s1960_s13 = inlined_call_operand.vmem [shape: f32[1,32], index: 13, kind: input, shape index: {}]   ;;  %s1961_s14 = inlined_call_operand.hbm [shape: f32[2,8,32], index: 14, kind: output, shape index: {}]  }
   0x1   :  { %20 = vsyncpa [#allocation10], 0 }
   0x2   :  { %21 = vsyncpa [#allocation8], 0 }
   0x3   :  { %23 = vsyncpa [#allocation8 + $0x1], 0  ;;  %s1704_s29 = smov 0   ;;  %s1706_s30 = smov 0  }
   0x4   :  { %s1708_s15 = smov 0   ;;  %s1710_s16 = smov 0  }
   0x5   :  { %s1712_s17 = smov 0   ;;  %s1714_s18 = smov 0  }
   0x6 LB: > { %1969 = sst [smem:[#allocation15_spill]] %s1588_s29  ;;  %s1258_s19 = sadd.s32 4294967295, %s1608_s18   ;;  %s1608_s18 = sphi %s1714_s18, %s29_s18   ;;  %s1604_s17 = sphi %s1712_s17, %s1986_s17   ;;  %s1600_s16 = sphi %s1710_s16, %s1985_s16   ;;  %s1596_s15 = sphi %s1708_s15, %s1984_s15   ;;  %s1592_s30 = sphi %s1706_s30, %s1988_s30   ;;  %s1588_s29 = sphi %s1704_s29, %s1987_s29  }
   0x7   : > { %1970 = sst [smem:[#allocation16_spill]] %s1596_s15  ;;  %s1259_s20 = sadd.s32 4294967294, %s1608_s18  }
   0x8   : > { %1971 = sst [smem:[#allocation17_spill]] %s1604_s17  ;;  %s41_s21 = sadd.s32 1, %s1604_s17 }
   0x9   : > { %1972 = sst [smem:[#allocation18_spill]] %s1608_s18  ;;  %s356_s22 = sadd.s32 1, %s1596_s15 }
   0xa   : > { %p43_p0 = scmp.ge.s32.totalorder %s41_s21, 2  ;;  %p366_p1 = scmp.ne.s32.totalorder %s1596_s15, %s1592_s30 }
   0xb   : > { %p367_p2 = scmp.eq.s32.totalorder %s1258_s19, 1  ;;  %p372_p3 = scmp.ne.s32.totalorder %s1592_s30, %s1588_s29 }
   0xc   : > { %s1990_s21 = smov (%p43_p0, %s41_s21), 0  ;;  %p373_p5 = scmp.eq.s32.totalorder %s1259_s20, 1 }
   0xd   : > { %1973 = sst [smem:[#allocation19_spill]] %s1990_s21  ;;  %p1744_p4 = por %p367_p2, %p366_p1 }
   0xe   : > { %s351_s24 = ssub.s32 %s1604_s17, %s1990_s21  ;;  %p1260_p6 = scmp.ge.s32.totalorder %s1608_s18, 1 }
   0xf   : > { %p354_p7 = scmp.eq.s32.totalorder %s351_s24, 0  ;;  %p1751_p8 = por %p373_p5, %p372_p3 }
  0x10   : > { %p380_p9 = scmp.lt.s32.totalorder %s1608_s18, 3  ;;  %p1763_p11 = scmp.eq.s32.totalorder %s1258_s19, 0 }
  0x11   : > { %s1975_s25 = scalar_select %p1751_p8, 1, 0 }
  0x12   : > { %s1757_s26 = scalar_select %p354_p7, %s1596_s15, %s356_s22  }
  0x13   : > { %1976 = sst [smem:[#allocation20_spill]] %s1975_s25  ;;  %p1759_p10 = pnand %p1260_p6, %p380_p9 }
  0x14   : > { %1977 = sst [smem:[#allocation21_spill]] %s1757_s26  ;;  %s403_s24 = sshll.u32 %s1953_s6, 4  ;;  %s404_s24 = int_to_ptr.hbm [resolvable:$true] %s403_s24 }
  0x15   : > { %p1347_p12 = pneg %p1759_p10  ;;  %s1610_s17 = smov [#allocation6]  }
  0x16   : > { %s405_s22 = sshll.u32 %s1610_s17, 4  ;;  %s426_s19 = sshll.u32 %s1957_s10, 4  ;;  %s406_s22 = int_to_ptr.vmem [resolvable:$true] %s405_s22  ;;  %s427_s19 = int_to_ptr.hbm [resolvable:$true] %s426_s19 }
  0x17   : > { %p1348_p13 = pnand %p1763_p11, %p1347_p12  ;;  %s1611_s25 = smov 64  }
  0x18   : > { %s1612_s29 = smov 4   ;;  %s1613_s18 = smov [#allocation9]  }
  0x19   : > { %1350 = dma.hbm_to_vmem [thread:$0]  (!%p1348_p13), %s404_s24, 256, %s406_s22, [#allocation7], %s1611_s25, %s1611_s25, %s1612_s29  }
  0x1a   : > { %s428_s21 = sshll.u32 %s1613_s18, 4  ;;  %470 = sbr.rel (%p1759_p10) target bundleno = 1937 (0x791), region = 76  ;;  %s429_s21 = int_to_ptr.vmem [resolvable:$true] %s428_s21 }
  0x1b   : > { %1353 = dma.hbm_to_vmem [thread:$0]  (!%p1348_p13), %s427_s19, 256, %s429_s21, [#allocation10], %s1611_s25, %s1611_s25, %s1612_s29  }
  0x1f   : > { %1575 = dma.done.wait (%p1763_p11), [#allocation7], 256  }
  0x20   : > { %1577 = vsyncadd (%p1763_p11), [#allocation7], 4294967040 }
  0x21   : > { %1579 = dma.done.wait (%p1763_p11), [#allocation10], 256  }
  0x22   : > { %1581 = vsyncadd (%p1763_p11), [#allocation10], 4294967040  ;;  %p528_p0 = scmp.lt.s32.totalorder %s1600_s16, 1  ;;  %vm547_vm0 = vcmask 261120   ;;  %v1614_v2 = vmov 32.0   ;;  %v1328_v14 = vld [vmem:[%s1951_s4 + $0x8] sm:$0xff] }
  0x23   : > { %1438 = vrcp.f32 %v1614_v2  ;;  %615 = vmatpush.bf16.msra.mxu0 %v1328_v14  ;;  %v1327_v15 = vld [vmem:[%s1951_s4] sm:$0xff]  ;;  %vm624_vm5 = vcmask 60416   ;;  %s1616_s26 = smov 88   ;;  %s1617_s27 = smov 120   ;;  %vm694_vm6 = vcmask 64512   ;;  %vm822_vm7 = vcmask 1043456  }
  0x24   : > { %s1789_s15 = scalar_select %p528_p0, %s1600_s16, 1  ;;  %v1430_v25 = vld [vmem:[%s1949_s2] ss:$0 sm:$0xff]  ;;  %vm904_vm8 = vcmask 126016   ;;  %vm911_vm9 = vcmask 191616   ;;  %vm918_vm10 = vcmask 257216  }
  0x25   : > { %v1431_v28 = vld [vmem:[%s1950_s3] ss:$0 sm:$0xff]  ;;  %s1618_s28 = smov 80   ;;  %s1619_s20 = smov 112  }
  0x26   : > { %s1268_s29 = sshll.u32 %s1789_s15, 3  ;;  %v1432_v32 = vld [vmem:[%s1952_s5] ss:$0 sm:$0xff]  ;;  %s1620_s24 = smov 104  }
  0x27   : > { %s538_s25 = scalar_lea.vmem %s1948_s1, %s1268_s29  ;;  %616 = vmatpush.bf16.msra.mxu0 %v1327_v15  ;;  %s1621_s22 = smov 96  }
  0x28   : > { %v544_v0 = vld [vmem:[%s538_s25] sm:$0xff]  ;;  %s1615_s25 = smov 72   ;;  %s1622_s19 = smov 48  }
  0x29   : > { %v548_v1 = vsel %vm547_vm0, %v544_v0, 0.0  ;;  %v1439_v3 = vpop.eup %1438  ;;  %s1623_s21 = smov 56   ;;  %s1624_s17 = smov 64  }
  0x2a   : > { %549 = vadd.xlane.f32.xlu0 %v548_v1  ;;  %v552_v4 = vmul.f32 32.0, %v1439_v3  ;;  %vm556_vm1 = vweird.f32 %v1439_v3  ;;  %s1625_s18 = smov 40  }
  0x2c   : > { %v553_v5 = vsub.f32 1.0, %v552_v4 }
  0x2e   : > { %v554_v6 = vmul.f32 %v1439_v3, %v553_v5 }
  0x30   : > { %v555_v7 = vadd.f32 %v1439_v3, %v554_v6 }
  0x32   : > { %v1798_v8 = vsel %vm556_vm1, %v1439_v3, %v555_v7 }
  0x9d   : > { %v550_v9 = vpop.xlane.xlu0 %549 }
  0x9e   : > { %v558_v10 = vmul.f32 %v1798_v8, %v550_v9 }
  0xa0   : > { %v559_v11 = vsub.f32 %v544_v0, %v558_v10 }
  0xa2   : > { %v560_v12 = vmul.f32 %v559_v11, %v559_v11 }
  0xa4   : > { %v561_v13 = vsel %vm547_vm0, %v560_v12, 0.0 }
  0xa5   : > { %562 = vadd.xlane.f32.xlu0 %v561_v13 }
 0x118   : > { %v563_v16 = vpop.xlane.xlu0 %562 }
 0x119   : > { %v564_v17 = vmul.f32 %v563_v16, %v1798_v8 }
 0x11b   : > { %v565_v18 = vadd.f32 1e-06, %v564_v17 }
 0x11d   : > { %1440 = vrsqrt.f32 %v565_v18  ;;  %vm572_vm3 = vweird.f32 %v565_v18 }
 0x123   : > { %v1441_v19 = vpop.eup %1440 }
 0x124   : > { %v567_v20 = vmul.f32 %v1441_v19, %v565_v18  ;;  %vm573_vm2 = vweird.f32 %v1441_v19 }
 0x125   : > { %vm574_vm4 = vmor %vm572_vm3, %vm573_vm2  ;;  %vm1117_vm3 = vcmask 523264  }
 0x126   : > { %v568_v21 = vmul.f32 %v1441_v19, %v567_v20 }
 0x128   : > { %v569_v22 = vmul.f32 0.5, %v568_v21 }
 0x12a   : > { %v570_v23 = vsub.f32 1.5, %v569_v22 }
 0x12c   : > { %v571_v24 = vmul.f32 %v1441_v19, %v570_v23 }
 0x12e   : > { %v575_v26 = vsel %vm574_vm4, %v1441_v19, %v571_v24 }
 0x12f   : > { %v576_v27 = vmul.f32 %v575_v26, %v559_v11 }
 0x131   : > { %v580_v29 = vmul.f32 %v1430_v25, %v576_v27 }
 0x133   : > { %v584_v30 = vadd.f32 %v1431_v28, %v580_v29 }
 0x135   : > { %v585_v31 = vpack.c.bf16 %v584_v30, %v584_v30 }
 0x137   : > { %1278 = vmatmul.msk.bf16.vlgmr.msra.gmra.mxu0 %vm547_vm0, %v585_v31 }
 0x1b4   : > { %v618_v33 = vpop.f32.mrf.mxu0 }
 0x1b5   : > { %v619_v34 = vadd.f32 %v1432_v32, %v618_v33 }
 0x1b7   : > { %v622_v35 = vmul.f32 0.35355338, %v619_v34  ;;  %v1819_v36 = vpack.c.bf16 %v619_v34, %v619_v34 }
 0x1b9   : > { %v623_v37 = vpack.c.bf16 %v622_v35, %v622_v35  ;;  %672 = vrot.lane.b32.xlu0 %v1819_v36, %s1615_s25  ;;  %642 = vrot.lane.b32.xlu1 %v1819_v36, %s1616_s26  ;;  %s1626_s25 = smov 8   ;;  %s1627_s26 = smov 16  }
 0x1bb   : > { %625 = vst.msk [vmem:[#allocation2] sm:$0xf] %vm624_vm5, %v623_v37  ;;  %637 = vrot.lane.b32.xlu2 %v623_v37, %s1617_s27  ;;  %s1628_s27 = smov 24  }
 0x1bc   : > { %v620_v38 = vpop.f32.mrf.mxu0 }
 0x1c1   : > { %657 = vrot.lane.b32.xlu1 %v1819_v36, %s1618_s28 }
 0x1c2   : > { %v682_v51 = vld [vmem:[#allocation2] sm:$0xf] }
 0x1c3   : > { %652 = vrot.lane.b32.xlu2 %v623_v37, %s1619_s20 }
 0x1c9   : > { %667 = vrot.lane.b32.xlu1 %v623_v37, %s1620_s24  ;;  %s534_s24 = scalar_lea.vmem %s1947_s0, %s1268_s29  ;;  %s525_s29 = sand.u32 1, %s1592_s30  }
 0x1cb   : > { %628 = vrot.lane.b32.xlu2 %v1819_v36, %s1621_s22 }
 0x215   : > { %v638_v39 = vpop.permute.xlu2 %637 }
 0x216   : > { %641 = vst.msk [vmem:[#allocation2 + $0x4] sm:$0xf] %vm624_vm5, %v638_v39 }
 0x21d   : > { %v653_v40 = vpop.permute.xlu2 %652  ;;  %v683_v54 = vld [vmem:[#allocation2 + $0x4] sm:$0xf] }
 0x21e   : > { %656 = vst.msk [vmem:[#allocation2 + $0x8] sm:$0xf] %vm624_vm5, %v653_v40 }
 0x225   : > { %v629_v41 = vpop.permute.xlu2 %628  ;;  %v684_v56 = vld [vmem:[#allocation2 + $0x8] sm:$0xf] }
 0x226   : > { %631 = vst.msk [vmem:[#allocation3] sm:$0xf] %vm624_vm5, %v629_v41 }
 0x22b   : > { %v673_v42 = vpop.permute.xlu0 %672  ;;  %v643_v43 = vpop.permute.xlu1 %642 }
 0x22c   : > { %676 = vst.msk [vmem:[#allocation3 + $0xc] sm:$0xf] %vm624_vm5, %v673_v42 }
 0x22d   : > { %646 = vst.msk [vmem:[#allocation3 + $0x4] sm:$0xf] %vm624_vm5, %v643_v43  ;;  %v686_v44 = vld [vmem:[#allocation3] sm:$0xf] }
 0x22e   : > { %v699_v45 = vsel %vm694_vm6, %v686_v44, 0 }
 0x22f   : > { %708 = vmatpush.bf16.xpose.msra.mxu1 %v699_v45 }
 0x233   : > { %v658_v46 = vpop.permute.xlu1 %657  ;;  %v689_v47 = vld [vmem:[#allocation3 + $0xc] sm:$0xf] }
 0x234   : > { %661 = vst.msk [vmem:[#allocation3 + $0x8] sm:$0xf] %vm624_vm5, %v658_v46  ;;  %v687_v48 = vld [vmem:[#allocation3 + $0x4] sm:$0xf]  ;;  %v756_v49 = vsel %vm694_vm6, %v689_v47, 0 }
 0x235   : > { %v718_v50 = vsel %vm694_vm6, %v687_v48, 0  ;;  %765 = vmatpush.bf16.xpose.msrb.mxu0 %v756_v49 }
 0x236   : > { %727 = vmatpush.bf16.xpose.msra.mxu2 %v718_v50  ;;  %1279 = vmatmul.msk.bf16.vlgmr.msra.gmra.mxu1 %vm694_vm6, %v682_v51 }
 0x23b   : > { %v668_v52 = vpop.permute.xlu1 %667  ;;  %v688_v53 = vld [vmem:[#allocation3 + $0x8] sm:$0xf] }
 0x23c   : > { %671 = vst.msk [vmem:[#allocation2 + $0xc] sm:$0xf] %vm624_vm5, %v668_v52  ;;  %v737_v55 = vsel %vm694_vm6, %v688_v53, 0 }
 0x23d   : > { %1280 = vmatmul.msk.bf16.vlgmr.msra.gmra.mxu2 %vm694_vm6, %v683_v54  ;;  %746 = vmatpush.bf16.xpose.msra.mxu3 %v737_v55 }
 0x243   : > { %v685_v57 = vld [vmem:[#allocation2 + $0xc] sm:$0xf] }
 0x244   : > { %1281 = vmatmul.msk.bf16.vlgmr.msra.gmra.mxu3 %vm694_vm6, %v684_v56  ;;  %1282 = vmatmul.msk.bf16.vlgmr.msrb.gmra.mxu0 %vm694_vm6, %v685_v57 }
 0x2b3   : > { %v710_v58 = vpop.f32.mrf.mxu1 }
 0x2b4   : > { %v771_v5 = vsel %vm694_vm6, %v710_v58, -inf }
 0x2bb   : > { %v712_v59 = vpop.f32.mrf.mxu1 }
 0x2c0   : > { %v729_v60 = vpop.f32.mrf.mxu2 }
 0x2c1   : > { %v767_v61 = vpop.f32.mrf.mxu0  ;;  %v774_v62 = vsel %vm694_vm6, %v729_v60, -inf }
 0x2c2   : > { %775 = vmax.xlane.f32.xlu1 %v774_v62  ;;  %v780_v63 = vsel %vm694_vm6, %v767_v61, -inf }
 0x2c3   : > { %781 = vmax.xlane.f32.xlu0 %v780_v63 }
 0x2c7   : > { %v748_v0 = vpop.f32.mrf.mxu3 }
 0x2c8   : > { %v731_v1 = vpop.f32.mrf.mxu2  ;;  %v777_v2 = vsel %vm694_vm6, %v748_v0, -inf }
 0x2c9   : > { %v769_v3 = vpop.f32.mrf.mxu0  ;;  %778 = vmax.xlane.f32.xlu2 %v777_v2 }
 0x2ca   : > { %v1330_v3 = vld [vmem:[#allocation6 + $0x8] sm:$0xff] }
 0x2cf   : > { %v750_v4 = vpop.f32.mrf.mxu3 }
 0x2d0   : > { %v1329_v4 = vld [vmem:[#allocation6] sm:$0xff] }
 0x2d1   : > { %772 = vmax.xlane.f32.xlu2 %v771_v5 }
 0x2d7   : > { %662 = vrot.lane.b32.xlu0 %v1819_v36, %s1622_s19 }
 0x2db   : > { %647 = vrot.lane.b32.xlu1 %v1819_v36, %s1623_s21  ;;  %s1267_s21 = sshll.u32 %s525_s29, 3 }
 0x2dc   : > { %s527_s20 = scalar_lea.vmem [#allocation11], %s1267_s21  ;;  %s1542_s21 = scalar_lea.hbm %s1961_s14, 16 }
 0x2df   : > { %632 = vrot.lane.b32.xlu0 %v1819_v36, %s1624_s17  ;;  %s1324_s17 = sshll.u32 %s1600_s16, 3  ;;  %s1137_s16 = scalar_lea.sflag [#allocation8], %s525_s29 }
 0x2e0   : > { %s1148_s28 = scalar_lea.hbm %s1961_s14, %s1324_s17 }
 0x2e1   : > { %s1152_s22 = sshll.u32 %s1148_s28, 4  ;;  %s1153_s22 = int_to_ptr.hbm [resolvable:$true] %s1152_s22 }
 0x2e2   : > { %s1536_s19 = sshra.s32 %s1153_s22, 4  ;;  %s1537_s19 = int_to_ptr.hbm [resolvable:$true] %s1536_s19 }
 0x2e3   : > { %s1538_s15 = scalar_lea.hbm %s1537_s19, 8  ;;  %p1543_p5 = scmp.lt.s32.totalorder %s1537_s19, %s1961_s14 }
 0x2e4   : > { %p1539_p1 = scmp.ne.s32.totalorder %s1537_s19, %s1538_s15  ;;  %p1544_p6 = scmp.lt.s32.totalorder %s1542_s21, %s1538_s15 }
 0x2e6   : > { %p1540_p2 = pnand %p1539_p1, %p1744_p4  ;;  %p1545_p7 = por %p1544_p6, %p1543_p5 }
 0x2e8   : > { %p1541_p3 = pneg %p1540_p2 }
 0x2ea   : > { %p1546_p9 = pnand %p1545_p7, %p1541_p3 }
 0x335   : > { %v776_v6 = vpop.xlane.xlu1 %775 }
 0x336   : > { %v784_v7 = vsub.f32 %v729_v60, %v776_v6  ;;  %v782_v9 = vpop.xlane.xlu0 %781 }
 0x337   : > { %v786_v10 = vsub.f32 %v767_v61, %v782_v9 }
 0x338   : > { %v789_v11 = vmul.f32 1.442695, %v784_v7 }
 0x339   : > { %v793_v12 = vmul.f32 1.442695, %v786_v10  ;;  %v1433_v10 = vld [vmem:[%s1954_s7] ss:$0 sm:$0xff] }
 0x33a   : > { %1442 = vpow2.f32 %v789_v11 }
 0x33b   : > { %1444 = vpow2.f32 %v793_v12  ;;  %v958_v12 = vld [vmem:[%s534_s24] sm:$0xff]  ;;  %s1150_s24 = sshll.u32 %s527_s20, 4  ;;  %s1151_s24 = int_to_ptr.vmem [resolvable:$true] %s1150_s24 }
 0x33c   : > { %v779_v13 = vpop.xlane.xlu2 %778 }
 0x33d   : > { %v785_v14 = vsub.f32 %v748_v0, %v779_v13 }
 0x33f   : > { %v791_v15 = vmul.f32 1.442695, %v785_v14 }
 0x340   : > { %v1443_v16 = vpop.eup %1442 }
 0x341   : > { %v1445_v17 = vpop.eup %1444  ;;  %1446 = vpow2.f32 %v791_v15  ;;  %v798_v18 = vsel %vm694_vm6, %v1443_v16, 0.0 }
 0x342   : > { %799 = vadd.xlane.f32.xlu2 %v798_v18  ;;  %v804_v19 = vsel %vm694_vm6, %v1445_v17, 0.0 }
 0x343   : > { %805 = vadd.xlane.f32.xlu1 %v804_v19 }
 0x344   : > { %v773_v20 = vpop.xlane.xlu2 %772 }
 0x345   : > { %v783_v21 = vsub.f32 %v710_v58, %v773_v20 }
 0x347   : > { %v1447_v22 = vpop.eup %1446  ;;  %v787_v23 = vmul.f32 1.442695, %v783_v21 }
 0x348   : > { %v801_v24 = vsel %vm694_vm6, %v1447_v22, 0.0 }
 0x349   : > { %1448 = vpow2.f32 %v787_v23  ;;  %v663_v25 = vpop.permute.xlu0 %662  ;;  %v1331_v23 = vld [vmem:[#allocation9] sm:$0xff] }
 0x34a   : > { %666 = vst.msk [vmem:[#allocation4 + $0x8] sm:$0xf] %vm624_vm5, %v663_v25  ;;  %802 = vadd.xlane.f32.xlu2 %v801_v24 }
 0x34d   : > { %v648_v26 = vpop.permute.xlu1 %647 }
 0x34e   : > { %651 = vst.msk [vmem:[#allocation4 + $0x4] sm:$0xf] %vm624_vm5, %v648_v26 }
 0x34f   : > { %v1449_v27 = vpop.eup %1448 }
 0x350   : > { %v795_v28 = vsel %vm694_vm6, %v1449_v27, 0.0 }
 0x351   : > { %v633_v29 = vpop.permute.xlu0 %632  ;;  %796 = vadd.xlane.f32.xlu0 %v795_v28  ;;  %v692_v30 = vld [vmem:[#allocation4 + $0x8] sm:$0xf] }
 0x352   : > { %635 = vst.msk [vmem:[#allocation4] sm:$0xf] %vm624_vm5, %v633_v29  ;;  %v862_v31 = vsel %vm822_vm7, %v692_v30, 0 }
 0x353   : > { %871 = vmatpush.bf16.msrb.mxu3 %v862_v31 }
 0x355   : > { %v691_v32 = vld [vmem:[#allocation4 + $0x4] sm:$0xf] }
 0x356   : > { %v843_v33 = vsel %vm822_vm7, %v691_v32, 0 }
 0x357   : > { %852 = vmatpush.bf16.msrb.mxu2 %v843_v33  ;;  %v1434_v33 = vld [vmem:[%s1955_s8] ss:$0 sm:$0xff] }
 0x359   : > { %v690_v34 = vld [vmem:[#allocation4] sm:$0xf] }
 0x35a   : > { %v824_v35 = vsel %vm822_vm7, %v690_v34, 0 }
 0x35b   : > { %833 = vmatpush.bf16.msrb.mxu1 %v824_v35 }
 0x35f   : > { %951 = vmatpush.bf16.msra.mxu1 %v1330_v3 }
 0x362   : > { %677 = vrot.lane.b32.xlu2 %v1819_v36, %s1625_s18 }
 0x363   : > { %952 = vmatpush.bf16.msra.mxu1 %v1329_v4 }
 0x3b5   : > { %v800_v37 = vpop.xlane.xlu2 %799 }
 0x3b6   : > { %1450 = vrcp.f32 %v800_v37  ;;  %v806_v42 = vpop.xlane.xlu1 %805 }
 0x3bc   : > { %v1451_v38 = vpop.eup %1450 }
 0x3bd   : > { %v812_v39 = vmul.f32 %v1451_v38, %v1443_v16  ;;  %v803_v40 = vpop.xlane.xlu2 %802 }
 0x3be   : > { %1452 = vrcp.f32 %v803_v40  ;;  %v1436_v40 = vld [vmem:[%s1958_s11] ss:$0 sm:$0xff] }
 0x3bf   : > { %v816_v41 = vpack.c.bf16 %v812_v39, %v812_v39  ;;  %1454 = vrcp.f32 %v806_v42 }
 0x3c1   : > { %1284 = vmatmul.msk.bf16.vlgmr.msrb.gmra.mxu2 %vm694_vm6, %v816_v41 }
 0x3c4   : > { %v1453_v43 = vpop.eup %1452  ;;  %v797_v44 = vpop.xlane.xlu0 %796 }
 0x3c5   : > { %v813_v45 = vmul.f32 %v1453_v43, %v1447_v22  ;;  %1456 = vrcp.f32 %v797_v44  ;;  %v678_v46 = vpop.permute.xlu2 %677  ;;  %v1455_v36 = vpop.eup %1454  ;;  %v1332_v22 = vld [vmem:[#allocation9 + $0x8] sm:$0xff] }
 0x3c6   : > { %681 = vst.msk [vmem:[#allocation4 + $0xc] sm:$0xf] %vm624_vm5, %v678_v46  ;;  %v814_v49 = vmul.f32 %v1455_v36, %v1445_v17  ;;  %1029 = vmatpush.bf16.msra.mxu2 %v1332_v22 }
 0x3c7   : > { %v817_v47 = vpack.c.bf16 %v813_v45, %v813_v45 }
 0x3c8   : > { %v818_v54 = vpack.c.bf16 %v814_v49, %v814_v49 }
 0x3c9   : > { %1285 = vmatmul.msk.bf16.vlgmr.msrb.gmra.mxu3 %vm694_vm6, %v817_v47  ;;  %v1336_v47 = vld [vmem:[%s1959_s12 + $0x18] sm:$0xff] }
 0x3ca   : > { %1030 = vmatpush.bf16.msra.mxu2 %v1331_v23  ;;  %1125 = vmatpush.bf16.msra.mxu3 %v1336_v47 }
 0x3cb   : > { %v1457_v48 = vpop.eup %1456 }
 0x3cc   : > { %v811_v50 = vmul.f32 %v1457_v48, %v1449_v27 }
 0x3cd   : > { %v693_v51 = vld [vmem:[#allocation4 + $0xc] sm:$0xf] }
 0x3ce   : > { %v815_v52 = vpack.c.bf16 %v811_v50, %v811_v50  ;;  %v881_v53 = vsel %vm822_vm7, %v693_v51, 0  ;;  %v1335_v51 = vld [vmem:[%s1959_s12 + $0x10] sm:$0xff] }
 0x3cf   : > { %890 = vmatpush.bf16.msra.mxu0 %v881_v53  ;;  %1126 = vmatpush.bf16.msra.mxu3 %v1335_v51 }
 0x3d0   : > { %1283 = vmatmul.msk.bf16.vlgmr.msrb.gmra.mxu1 %vm694_vm6, %v815_v52 }
 0x3d2   : > { %1286 = vmatmul.msk.bf16.vlgmr.msra.gmra.mxu0 %vm694_vm6, %v818_v54 }
 0x444   : > { %v854_v55 = vpop.f32.mrf.mxu2 }
 0x445   : > { %v899_v56 = vpack.c.bf16 %v854_v55, %v854_v55 }
 0x447   : > { %901 = vrot.lane.b32.xlu2 %v899_v56, %s1626_s25  ;;  %v1334_v56 = vld [vmem:[%s1959_s12 + $0x8] sm:$0xff] }
 0x448   : > { %1127 = vmatpush.bf16.msra.mxu3 %v1334_v56 }
 0x44c   : > { %v856_v57 = vpop.f32.mrf.mxu2  ;;  %v873_v58 = vpop.f32.mrf.mxu3 }
 0x44d   : > { %v906_v59 = vpack.c.bf16 %v873_v58, %v873_v58  ;;  %v835_v60 = vpop.f32.mrf.mxu1 }
 0x44e   : > { %v896_v61 = vpack.c.bf16 %v835_v60, %v835_v60  ;;  %v1333_v60 = vld [vmem:[%s1959_s12] sm:$0xff] }
 0x44f   : > { %908 = vrot.lane.b32.xlu2 %v906_v59, %s1627_s26  ;;  %v892_v62 = vpop.f32.mrf.mxu0  ;;  %1128 = vmatpush.bf16.msra.mxu3 %v1333_v60 }
 0x450   : > { %898 = vst.msk [vmem:[#allocation5] sm:$0xf] %vm624_vm5, %v896_v61  ;;  %v913_v0 = vpack.c.bf16 %v892_v62, %v892_v62 }
 0x454   : > { %v875_v63 = vpop.f32.mrf.mxu3 }
 0x455   : > { %v837_v1 = vpop.f32.mrf.mxu1 }
 0x457   : > { %915 = vrot.lane.b32.xlu2 %v913_v0, %s1628_s27  ;;  %v894_v2 = vpop.f32.mrf.mxu0 }
 0x4a1   : > { %v902_v5 = vpop.permute.xlu2 %901 }
 0x4a2   : > { %905 = vst.msk [vmem:[#allocation5] sm:$0xf] %vm904_vm8, %v902_v5 }
 0x4a9   : > { %v909_v6 = vpop.permute.xlu2 %908 }
 0x4aa   : > { %912 = vst.msk [vmem:[#allocation5] sm:$0xf] %vm911_vm9, %v909_v6 }
 0x4b1   : > { %v916_v7 = vpop.permute.xlu2 %915 }
 0x4b2   : > { %919 = vst.msk [vmem:[#allocation5] sm:$0xf] %vm918_vm10, %v916_v7 }
 0x4b9   : > { %v920_v9 = vld [vmem:[#allocation5] sm:$0xf] }
 0x4ba   : > { %1295 = vmatmul.msk.bf16.vlgmr.msra.gmra.mxu1 %vm547_vm0, %v920_v9 }
 0x537   : > { %v954_v11 = vpop.f32.mrf.mxu1 }
 0x538   : > { %v955_v13 = vadd.f32 %v1433_v10, %v954_v11 }
 0x53a   : > { %v1875_v14 = vadd.f32 %v958_v12, %v955_v13 }
 0x53c   : > { %v962_v15 = vsel %vm547_vm0, %v1875_v14, 0.0 }
 0x53d   : > { %963 = vadd.xlane.f32.xlu1 %v962_v15 }
 0x53f   : > { %v956_v16 = vpop.f32.mrf.mxu1 }
 0x5b0   : > { %v964_v17 = vpop.xlane.xlu1 %963 }
 0x5b1   : > { %v972_v18 = vmul.f32 %v964_v17, %v1798_v8 }
 0x5b3   : > { %v973_v19 = vsub.f32 %v1875_v14, %v972_v18 }
 0x5b5   : > { %v974_v20 = vmul.f32 %v973_v19, %v973_v19 }
 0x5b7   : > { %v975_v21 = vsel %vm547_vm0, %v974_v20, 0.0 }
 0x5b8   : > { %976 = vadd.xlane.f32.xlu2 %v975_v21 }
 0x62b   : > { %v977_v24 = vpop.xlane.xlu2 %976 }
 0x62c   : > { %v978_v25 = vmul.f32 %v977_v24, %v1798_v8  ;;  %v1435_v8 = vld [vmem:[%s1956_s9] ss:$0 sm:$0xff] }
 0x62e   : > { %v979_v26 = vadd.f32 1e-06, %v978_v25  ;;  %v1437_v25 = vld [vmem:[%s1960_s13] ss:$0 sm:$0xff] }
 0x630   : > { %1458 = vrsqrt.f32 %v979_v26  ;;  %vm986_vm12 = vweird.f32 %v979_v26 }
 0x636   : > { %v1459_v27 = vpop.eup %1458 }
 0x637   : > { %v981_v28 = vmul.f32 %v1459_v27, %v979_v26  ;;  %vm987_vm11 = vweird.f32 %v1459_v27 }
 0x638   : > { %vm988_vm13 = vmor %vm986_vm12, %vm987_vm11 }
 0x639   : > { %v982_v29 = vmul.f32 %v1459_v27, %v981_v28 }
 0x63b   : > { %v983_v30 = vmul.f32 0.5, %v982_v29 }
 0x63d   : > { %v984_v31 = vsub.f32 1.5, %v983_v30 }
 0x63f   : > { %v985_v32 = vmul.f32 %v1459_v27, %v984_v31 }
 0x641   : > { %v989_v34 = vsel %vm988_vm13, %v1459_v27, %v985_v32 }
 0x642   : > { %v990_v35 = vmul.f32 %v989_v34, %v973_v19 }
 0x644   : > { %v994_v37 = vmul.f32 %v1434_v33, %v990_v35 }
 0x646   : > { %v998_v38 = vadd.f32 %v1435_v8, %v994_v37 }
 0x648   : > { %v999_v39 = vpack.c.bf16 %v998_v38, %v998_v38 }
 0x64a   : > { %1304 = vmatmul.msk.bf16.vlgmr.msra.gmra.mxu2 %vm547_vm0, %v999_v39 }
 0x6cd   : > { %v1032_v41 = vpop.f32.mrf.mxu2 }
 0x6ce   : > { %v1033_v42 = vadd.f32 %v1436_v40, %v1032_v41 }
 0x6d0   : > { %v1037_v43 = vmul.f32 0.70710677, %v1033_v42  ;;  %v1036_v21 = vmul.f32 0.5, %v1033_v42 }
 0x6d2   : > { %v1038_v44 = vmul.f32 %v1037_v43, %v1037_v43 }
 0x6d4   : > { %v1039_v45 = vmin.f32 %v1038_v44, 16.0 }
 0x6d5   : > { %v1034_v46 = vpop.f32.mrf.mxu2 }
 0x6d6   : > { %v1040_v36 = vmul.f32 2.1237322e-06, %v1039_v45  ;;  %v1051_v48 = vmul.f32 3.8918573e-05, %v1039_v45 }
 0x6d8   : > { %v1041_v49 = vadd.f32 0.00028619796, %v1040_v36  ;;  %v1052_v50 = vadd.f32 0.001143296, %v1051_v48 }
 0x6da   : > { %v1042_v52 = vmul.f32 %v1041_v49, %v1039_v45  ;;  %v1053_v53 = vmul.f32 %v1052_v50, %v1039_v45 }
 0x6dc   : > { %v1054_v54 = vadd.f32 0.014752088, %v1053_v53  ;;  %v1043_v55 = vadd.f32 0.0036580483, %v1042_v52 }
 0x6de   : > { %v1055_v57 = vmul.f32 %v1054_v54, %v1039_v45  ;;  %v1044_v59 = vmul.f32 %v1043_v55, %v1039_v45 }
 0x6e0   : > { %v1056_v58 = vadd.f32 0.112945676, %v1055_v57  ;;  %v1045_v63 = vadd.f32 0.05243302, %v1044_v59 }
 0x6e2   : > { %v1057_v61 = vmul.f32 %v1056_v58, %v1039_v45  ;;  %v1046_v2 = vmul.f32 %v1045_v63, %v1039_v45 }
 0x6e4   : > { %v1058_v62 = vadd.f32 0.4994258, %v1057_v61  ;;  %v1047_v3 = vadd.f32 0.18741608, %v1046_v2 }
 0x6e6   : > { %v1059_v0 = vmul.f32 %v1058_v62, %v1039_v45  ;;  %v1048_v5 = vmul.f32 %v1047_v3, %v1039_v45 }
 0x6e8   : > { %v1060_v1 = vadd.f32 1.0, %v1059_v0  ;;  %v1049_v10 = vadd.f32 1.1283791, %v1048_v5 }
 0x6ea   : > { %1460 = vrcp.f32 %v1060_v1  ;;  %v1072_v9 = vand.u32 2147483648, %v1060_v1  ;;  %v1070_v12 = vand.u32 2147483647, %v1060_v1  ;;  %vm1066_vm15 = vweird.f32 %v1060_v1 }
 0x6eb   : > { %v1050_v16 = vmul.f32 %v1049_v10, %v1037_v43 }
 0x6ec   : > { %v1073_v15 = vor.u32 1.1754944e-38, %v1072_v9  ;;  %vm1071_vm2 = vcmp.eq.f32.partialorder %v1070_v12, 8.507059e+37 }
 0x6f0   : > { %v1461_v4 = vpop.eup %1460 }
 0x6f1   : > { %v1062_v6 = vmul.f32 %v1461_v4, %v1060_v1  ;;  %vm1067_vm14 = vweird.f32 %v1461_v4 }
 0x6f2   : > { %vm1068_vm1 = vmor %vm1066_vm15, %vm1067_vm14 }
 0x6f3   : > { %v1063_v7 = vsub.f32 1.0, %v1062_v6 }
 0x6f5   : > { %v1064_v11 = vmul.f32 %v1461_v4, %v1063_v7 }
 0x6f7   : > { %v1065_v13 = vadd.f32 %v1461_v4, %v1064_v11 }
 0x6f9   : > { %v1069_v17 = vsel %vm1068_vm1, %v1461_v4, %v1065_v13 }
 0x6fa   : > { %v1074_v18 = vsel %vm1071_vm2, %v1073_v15, %v1069_v17 }
 0x6fb   : > { %v1075_v19 = vmul.f32 %v1074_v18, %v1050_v16 }
 0x6fd   : > { %v1305_v20 = vclamps-f32 %v1075_v19, 1.0 }
 0x6ff   : > { %v1078_v22 = vadd.f32 1.0, %v1305_v20 }
 0x701   : > { %v1079_v23 = vmul.f32 %v1078_v22, %v1036_v21 }
 0x703   : > { %v1080_v24 = vpack.c.bf16 %v1079_v23, %v1079_v23 }
 0x705   : > { %1322 = vmatmul.msk.bf16.vlgmr.msra.gmra.mxu3 %vm1117_vm3, %v1080_v24 }
 0x788   : > { %v1130_v26 = vpop.f32.mrf.mxu3 }
 0x789   : > { %v1131_v27 = vadd.f32 %v1437_v25, %v1130_v26 }
 0x78b   : > { %v1134_v28 = vadd.f32 %v1131_v27, %v1875_v14 }
 0x78d   : > { %1135 = vst.msk [vmem:[%s527_s20] sm:$0xff] %vm547_vm0, %v1134_v28 }
 0x78e   : > { %1549 = shalt.err (!%p1546_p9)
}
 0x78f   : > { %1345 = dma.vmem_to_hbm [thread:$0]  (%p1744_p4), %s1151_s24, 128, %s1153_s22, %s1137_s16  }
 0x790   : > { %v1132_v14 = vpop.f32.mrf.mxu3 }
 0x791 PF: > { %s1980_s29 = sld [smem:[#allocation18_spill]] }
 0x792   : > { %s1981_s27 = sld [smem:[#allocation15_spill]] }
 0x797   : > { %p1362_p10 = scmp.ge.s32.totalorder %s1980_s29, 2 }
 0x798   : > { %s1164_s20 = sand.u32 1, %s1981_s27  }
 0x799   : > { %p1355_p11 = pnand %p1362_p10, %p1751_p8  ;;  %s1165_s17 = scalar_lea.sflag [#allocation8], %s1164_s20 }
 0x79b   : > { %p1356_p12 = pneg %p1355_p11 }
 0x79d   : > { %1583 = dma.done.wait (%p1356_p12), %s1165_s17, 128  }
 0x79e   : > { %1585 = vsyncadd (%p1356_p12), %s1165_s17, 4294967168  ;;  %s29_s18 = sadd.s32 1, %s1980_s29   ;;  %s1983_s19 = sld [smem:[#allocation16_spill]] }
 0x79f   : > { %p26_p13 = scmp.ge.s32.totalorder %s29_s18, 4   ;;  %s1984_s15 = sld [smem:[#allocation21_spill]] }
 0x7a0   : > { %s1985_s16 = sld [smem:[#allocation17_spill]]  ;;  %s1987_s29 = smov %s1592_s30 }
 0x7a1   : > { %s1986_s17 = sld [smem:[#allocation19_spill]]  ;;  %28 = sbr.rel (!%p26_p13) target bundleno = 6 (0x6), region = 136 }
 0x7a4   : > { %s1988_s30 = smov %s1983_s19 }
 0x7a6   :  { %1171 = vsyncpa [#allocation7], 1 }
 0x7a7   :  { %1173 = vsyncpa [#allocation7 + $0x1], 1 }
 0x7a8   :  { %1174 = vsyncpa [#allocation10], 1 }
 0x7a9   :  { %1175 = vsyncpa [#allocation8], 1 }
 0x7aa   :  { %1177 = vsyncpa [#allocation8 + $0x1], 1 }

</bundles_post_ra>
